<compile_context>
chip_gen: v7x
topology: tpu7x:2x2x1
jax: 0.10.0
libtpu: 0.0.40
codegen_flags: <defaults>
</compile_context>

<pallas_src>
import functools
import itertools

import numpy as np
import jax
import jax.numpy as jnp
from jax import lax
from jax.experimental import pallas as pl
from jax.experimental.pallas import tpu as pltpu

_LANES = 128
_NEG = -1e30          # mask value; underflows cleanly in exp


def _round_up(x, m):
    return (x + m - 1) // m * m


def _vmem_limit_bytes():
    """Per-generation scoped-VMEM budget (v7x: 64 MiB physical; v5e/v6e: 128 MiB)."""
    try:
        cap = int(pltpu.get_tpu_info().vmem_capacity_bytes)
    except Exception:
        cap = 64 * 1024 * 1024                      # v7x-safe fallback
    return min(cap * 3 // 4, 100 * 1024 * 1024)     # leave headroom for compiler scratch


def _is_v5():
    try:
        return "v5" in jax.devices()[0].device_kind.lower()
    except Exception:
        return False


def _pick_divisor(n, candidates):
    for c in candidates:
        if n % c == 0:
            return c
    return n


def _pick_row_tile(np_):
    """Largest 128-multiple row tile dividing Np while keeping >= 2 row tiles (v7x megacore)."""
    for t in (2048, 1024, 512, 256, 128):
        if np_ % t == 0 and 2 * t <= np_:
            return t
    return min(np_, 128)


# ----------------------------------------------------------------------------
# Kernel A: L2-normalize rows, folding 1/temperature into the row scale.
#   xn[i] = x[i] * rsqrt(max(|x[i]|^2, 1e-20)) * (1/sqrt(T))
# so that xn[i] . xn[j] == cos(x[i], x[j]) / T.  Dual output: f32 + matmul dtype.
# ----------------------------------------------------------------------------
def _normalize_kernel(x_ref, xn32_ref, xnmm_ref, *, inv_sqrt_t):
    x = x_ref[...]
    sumsq = jnp.sum(x * x, axis=-1, keepdims=True)
    # clamp_min(1e-10) on the norm == clamp of 1e-20 on the squared norm.
    scale = lax.rsqrt(jnp.maximum(sumsq, jnp.float32(1e-20))) * jnp.float32(inv_sqrt_t)
    y = x * scale
    xn32_ref[...] = y
    xnmm_ref[...] = y.astype(xnmm_ref.dtype)


def normalize_scaled_pallas(x_pad, temperature, mm_dtype):
    """x_pad: [Np, Dp] f32 (zero-padded) -> (xn_f32 [Np, Dp], xn_mm [Np, Dp])."""
    np_, dp = x_pad.shape
    tm = _pick_divisor(np_, (1024, 512, 256, 128))   # HBM-bound elementwise: big tiles
    kernel = functools.partial(_normalize_kernel,
                               inv_sqrt_t=float(1.0 / np.sqrt(temperature)))
    ce = pl.CostEstimate(flops=3 * np_ * dp, transcendentals=np_,
                         bytes_accessed=np_ * dp * (4 + 4 + np.dtype(mm_dtype).itemsize))
    return pl.pallas_call(
        kernel,
        out_shape=(jax.ShapeDtypeStruct((np_, dp), jnp.float32),
                   jax.ShapeDtypeStruct((np_, dp), mm_dtype)),
        grid=(np_ // tm,),
        in_specs=[pl.BlockSpec((tm, dp), lambda i: (i, 0))],
        out_specs=[pl.BlockSpec((tm, dp), lambda i: (i, 0)),
                   pl.BlockSpec((tm, dp), lambda i: (i, 0))],
        compiler_params=pltpu.CompilerParams(
            dimension_semantics=("parallel",),
            vmem_limit_bytes=_vmem_limit_bytes()),
        cost_estimate=ce,
    )(x_pad)


# ----------------------------------------------------------------------------
# Kernel B: fused pairwise-logits + masked logsumexp (flash-style, bf16 MXU).
#   For each (large) row tile i, stream column tiles j of xn:
#     s = rows @ cols^T  (NT dot_general, f32 accumulation) == cos/T
#     mask diagonal (rc_diff == j*tn - i*tm) and padded columns (additive bias)
#     online max / sum -> per-row logsumexp.
#   Output: minimal (Np, 1) f32 column, written once per row tile.
# ----------------------------------------------------------------------------
def _masked_lse_kernel(rows_ref, cols_ref, rcdiff_ref, bias_ref, out_ref,
                       m_ref, l_ref, *, tm, tn):
    i = pl.program_id(0)
    j = pl.program_id(1)

    @pl.when(j == 0)
    def _():
        m_ref[...] = jnp.full_like(m_ref, jnp.float32(_NEG))
        l_ref[...] = jnp.zeros_like(l_ref)

    # NT matmul on the MXU; bf16 operands, f32 accumulation.
    s = lax.dot_general(
        rows_ref[...], cols_ref[...],
        dimension_numbers=(((1,), (1,)), ((), ())),
        preferred_element_type=jnp.float32)               # [tm, tn] == cos/T

    # fill_diagonal_(-inf) + mask zero-padded columns, cheaply:
    #   global_row == global_col  <=>  (local_row - local_col) == j*tn - i*tm,
    # where rc_diff is a loop-invariant (tm, tn) constant (block index (0,0) every
    # step, so it stays resident in VMEM) and bias is 0 / -1e30 per column.
    delta = j * tn - i * tm
    s = jnp.where(rcdiff_ref[...] == delta, jnp.float32(_NEG), s + bias_ref[...])

    m_old = m_ref[...]
    m_new = jnp.maximum(m_old, jnp.max(s, axis=-1, keepdims=True))
    l_ref[...] = (l_ref[...] * jnp.exp(m_old - m_new)
                  + jnp.sum(jnp.exp(s - m_new), axis=-1, keepdims=True))
    m_ref[...] = m_new

    @pl.when(j == pl.num_programs(1) - 1)
    def _():
        out_ref[...] = m_ref[...] + jnp.log(l_ref[...])   # [tm, 1]


def masked_lse_pallas(xn_mm, n_real):
    """xn_mm: [Np, Dp] (rows pre-scaled by 1/sqrt(T)) -> per-row logsumexp [n_real]."""
    np_, dp = xn_mm.shape
    tn = 128 if (_is_v5() or np_ % 256 != 0) else 256    # 256-wide MXU fill on v6e/v7x
    tm = _pick_row_tile(np_)
    mm_bytes = np.dtype(xn_mm.dtype).itemsize

    rc_diff = (lax.broadcasted_iota(jnp.int32, (tm, tn), 0)
               - lax.broadcasted_iota(jnp.int32, (tm, tn), 1))
    col_bias = jnp.where(jnp.arange(np_, dtype=jnp.int32) < n_real,
                         jnp.float32(0.0), jnp.float32(_NEG)).reshape(1, np_)

    grid = (np_ // tm, np_ // tn)
    kernel = functools.partial(_masked_lse_kernel, tm=tm, tn=tn)
    ce = pl.CostEstimate(
        flops=2 * np_ * np_ * dp,
        transcendentals=np_ * np_,
        bytes_accessed=(grid[0] * np_ * dp + np_ * dp) * mm_bytes + np_ * 4)
    out = pl.pallas_call(
        kernel,
        out_shape=jax.ShapeDtypeStruct((np_, 1), jnp.float32),
        grid=grid,
        in_specs=[pl.BlockSpec((tm, dp), lambda i, j: (i, 0)),    # row tiles (large)
                  pl.BlockSpec((tn, dp), lambda i, j: (j, 0)),    # column tiles (streamed)
                  pl.BlockSpec((tm, tn), lambda i, j: (0, 0)),    # rc_diff constant
                  pl.BlockSpec((1, tn), lambda i, j: (0, j))],    # per-column bias
        out_specs=pl.BlockSpec((tm, 1), lambda i, j: (i, 0)),
        scratch_shapes=[pltpu.VMEM((tm, 1), jnp.float32),         # running max
                        pltpu.VMEM((tm, 1), jnp.float32)],        # running sum
        compiler_params=pltpu.CompilerParams(
            dimension_semantics=("parallel", "arbitrary"),
            vmem_limit_bytes=_vmem_limit_bytes()),
        cost_estimate=ce,
    )(xn_mm, xn_mm, rc_diff, col_bias)
    return out[:n_real, 0]


# ----------------------------------------------------------------------------
# Host-side linear-sum assignment (maximize), exact brute force for small S.
# ----------------------------------------------------------------------------
def _assign_maximize(cost: np.ndarray) -> np.ndarray:
    # TODO(synk): scipy.optimize.linear_sum_assignment (Hungarian) is a host-side,
    # data-dependent combinatorial search with no Pallas equivalent; exact brute
    # force over permutations here (O(S!) — fine for small S).
    s = cost.shape[0]
    best_perm, best_val = None, -np.inf
    for perm in itertools.permutations(range(s)):
        val = cost[np.arange(s), list(perm)].sum()
        if val > best_val:
            best_val, best_perm = val, perm
    return np.asarray(best_perm, dtype=np.int64)


# ----------------------------------------------------------------------------
# HungarianLoss2 forward
# ----------------------------------------------------------------------------
def hungarian_loss2(inputs, targets, temperature=1.0, reduction="mean",
                    mm_dtype=jnp.bfloat16):
    """inputs, targets: [B, S, D] -> scalar loss (or [B, 2, S] if 'none')."""
    B, S, D = inputs.shape
    A = 2
    N = B * A * S

    slots = jnp.stack([inputs, targets], axis=1)              # [B, 2, S, D]
    flat = slots.reshape(N, D).astype(jnp.float32)            # [N, D]

    # Zero-pad N and D up to lane/MXU-aligned multiples.
    Np = _round_up(N, 256)
    Dp = _round_up(D, _LANES)
    x_pad = jnp.pad(flat, ((0, Np - N), (0, Dp - D)))

    # Kernel A: normalized, 1/sqrt(T)-scaled rows (f32 copy + matmul-dtype copy).
    xn32, xnmm = normalize_scaled_pallas(x_pad, temperature, mm_dtype)

    # Dispatch the small per-image cross blocks FIRST (the only thing the host needs)...
    xn_r = xn32[:N].reshape(B, A, S, Dp)
    cross = jnp.einsum("bsd,btd->bst", xn_r[:, 0], xn_r[:, 1])  # == cos/T

    # ...then enqueue the dominant O(N^2*D) kernel BEFORE blocking on the host, so it
    # executes on the device while Python waits for `cross` and runs the matching.
    lse = masked_lse_pallas(xnmm, n_real=N)                    # [N]

    cross_np = np.asarray(jax.device_get(cross))               # blocks only on `cross`
    # Matching + target logits straight from the already-computed cross blocks
    # (cross[b, s, t] == logits between slot (b,0,s) and slot (b,1,t)); no device gather.
    tgt_logit = np.empty((B, A, S), dtype=np.float32)
    for b in range(B):
        cols = _assign_maximize(cross_np[b])
        tgt_logit[b, 0, :] = cross_np[b, np.arange(S), cols]
        tgt_logit[b, 1, :] = cross_np[b, np.argsort(cols), np.arange(S)]

    per_row = lse - jnp.asarray(tgt_logit.reshape(N))          # [N]

    if reduction == "mean":
        return jnp.mean(per_row)
    elif reduction == "sum":
        return jnp.sum(per_row)
    elif reduction == "none":
        return per_row.reshape(B, A, S)
    else:
        raise ValueError(reduction)


# ----------------------------------------------------------------------------
# Pure NumPy (float64) reference for the sanity check.
# ----------------------------------------------------------------------------
def _reference(inputs, targets, temperature, reduction):
    inputs = np.asarray(inputs, dtype=np.float64)
    targets = np.asarray(targets, dtype=np.float64)
    B, S, D = inputs.shape
    A = 2
    N = B * A * S
    slots = np.stack([inputs, targets], axis=1).reshape(N, D)
    norm = np.linalg.norm(slots, axis=-1, keepdims=True)
    xn = slots / np.maximum(norm, 1e-10)
    cos = xn @ xn.T
    cos6 = cos.reshape(B, A, S, B, A, S)
    tgt = np.full((B, A, S), -1, dtype=np.int64)
    for b in range(B):
        cols = _assign_maximize(cos6[b, 0, :, b, 1, :])
        tgt[b, 0, :] = cols + S * (A * b + 1)
        tgt[b, 1, :] = np.argsort(cols) + S * (A * b)
    tgt_flat = tgt.reshape(N)
    logits = cos / temperature
    np.fill_diagonal(logits, -np.inf)
    m = logits.max(axis=-1, keepdims=True)
    lse = m[:, 0] + np.log(np.exp(logits - m).sum(axis=-1))
    per_row = lse - logits[np.arange(N), tgt_flat]
    if reduction == "mean":
        return per_row.mean()
    if reduction == "sum":
        return per_row.sum()
    return per_row.reshape(B, A, S)


if __name__ == "__main__":
    B, S, D = 2, 8, 32
    temperature = 0.5
    key = jax.random.PRNGKey(0)
    k1, k2 = jax.random.split(key)
    inputs = jax.random.normal(k1, (B, S, D), dtype=jnp.float32)
    targets = jax.random.normal(k2, (B, S, D), dtype=jnp.float32)

    ref_mean = _reference(inputs, targets, temperature, "mean")
    ref_none = _reference(inputs, targets, temperature, "none")

    # f32 matmul path: tight check against the float64 reference.
    loss_f32 = jax.block_until_ready(
        hungarian_loss2(inputs, targets, temperature=temperature,
                        reduction="mean", mm_dtype=jnp.float32))
    assert np.allclose(np.asarray(loss_f32), ref_mean, rtol=1e-4, atol=1e-4), (loss_f32, ref_mean)

    # bf16 matmul path (default, fast): operand rounding only — accumulation stays f32
    # and matching / target logits stay f32 — so a modestly looser tolerance suffices.
    loss_bf16 = jax.block_until_ready(
        hungarian_loss2(inputs, targets, temperature=temperature, reduction="mean"))
    assert np.allclose(np.asarray(loss_bf16), ref_mean, rtol=2e-2, atol=5e-2), (loss_bf16, ref_mean)

    loss_none = jax.block_until_ready(
        hungarian_loss2(inputs, targets, temperature=temperature, reduction="none"))
    assert np.allclose(np.asarray(loss_none), ref_none, rtol=2e-2, atol=5e-2)

    print("KERNEL_OK")
</pallas_src>

<mosaic_0001>
module attributes {stable_mosaic.version = 11 : i64} {
  func.func @_normalize_kernel(%arg0: i32, %arg1: memref<256x128xf32, #tpu.memory_space<vmem>>, %arg2: memref<256x128xf32, #tpu.memory_space<vmem>>, %arg3: memref<256x128xf32, #tpu.memory_space<vmem>>) attributes {dimension_semantics = [#tpu.dimension_semantics<parallel>], iteration_bounds = array<i64: 1>, scalar_prefetch = 0 : i64, scratch_operands = 0 : i64, tpu.core_type = #tpu.core_type<tc>, window_params = [{transform_indices = @transform_0, window_bounds = array<i64: 256, 128>}, {transform_indices = @transform_1, window_bounds = array<i64: 256, 128>}, {transform_indices = @transform_2, window_bounds = array<i64: 256, 128>}]} {
    %c0 = arith.constant 0 : index
    %c0_0 = arith.constant 0 : index
    %0 = vector.load %arg1[%c0, %c0_0] : memref<256x128xf32, #tpu.memory_space<vmem>>, vector<256x128xf32>
    %1 = arith.mulf %0, %0 : vector<256x128xf32>
    %cst = arith.constant dense<0.000000e+00> : vector<256xf32>
    %2 = vector.multi_reduction <add>, %1, %cst [1] : vector<256x128xf32> to vector<256xf32>
    %3 = vector.shape_cast %2 : vector<256xf32> to vector<256x1xf32>
    %cst_1 = arith.constant 9.99999968E-21 : f32
    %4 = vector.broadcast %cst_1 : f32 to vector<256x1xf32>
    %5 = arith.maximumf %3, %4 : vector<256x1xf32>
    %6 = math.rsqrt %5 : vector<256x1xf32>
    %cst_2 = arith.constant 1.41421354 : f32
    %7 = vector.broadcast %cst_2 : f32 to vector<256x1xf32>
    %8 = arith.mulf %6, %7 : vector<256x1xf32>
    %9 = vector.broadcast %8 : vector<256x1xf32> to vector<256x128xf32>
    %10 = arith.mulf %0, %9 : vector<256x128xf32>
    %c0_3 = arith.constant 0 : index
    %c0_4 = arith.constant 0 : index
    %11 = vector.load %arg2[%c0_3, %c0_4] : memref<256x128xf32, #tpu.memory_space<vmem>>, vector<256x128xf32>
    tpu.vector_store %arg2[%c0_3, %c0_4], %10 {strides = array<i32>} : memref<256x128xf32, #tpu.memory_space<vmem>>, vector<256x128xf32>,
    %c0_5 = arith.constant 0 : index
    %c0_6 = arith.constant 0 : index
    %12 = vector.load %arg3[%c0_5, %c0_6] : memref<256x128xf32, #tpu.memory_space<vmem>>, vector<256x128xf32>
    tpu.vector_store %arg3[%c0_5, %c0_6], %10 {strides = array<i32>} : memref<256x128xf32, #tpu.memory_space<vmem>>, vector<256x128xf32>,
    return
  }
  func.func @transform_0(%arg0: i32) -> (i32, i32) {
    %c0_i32 = arith.constant 0 : i32
    %c0_i32_0 = arith.constant 0 : i32
    return %arg0, %c0_i32 : i32, i32
  }
  func.func @transform_1(%arg0: i32) -> (i32, i32) {
    %c0_i32 = arith.constant 0 : i32
    %c0_i32_0 = arith.constant 0 : i32
    return %arg0, %c0_i32 : i32, i32
  }
  func.func @transform_2(%arg0: i32) -> (i32, i32) {
    %c0_i32 = arith.constant 0 : i32
    %c0_i32_0 = arith.constant 0 : i32
    return %arg0, %c0_i32 : i32, i32
  }
}

</mosaic_0001>

<bundles_post_ra>
// kernel: tpu_custom_call.1
= control target key start
LH: loop header
LB: loop body
LE: loop exit
PB: predicated region body
PF: predicated region fallthrough
CT: control target
= control target key end

     0   :  { %8 = vsyncpa [#allocation3], 0  ;;  %s752_s0 = inlined_call_operand.hbm [shape: f32[256,128], index: 0, kind: input, shape index: {}]   ;;  %s753_s1 = inlined_call_operand.hbm [shape: f32[256,128], index: 1, kind: output, shape index: {0}]   ;;  %s754_s2 = inlined_call_operand.hbm [shape: f32[256,128], index: 2, kind: output, shape index: {1}]  }
   0x1   :  { %9 = vsyncpa [#allocation4], 0 }
   0x2   :  { %10 = vsyncpa [#allocation7], 0  ;;  %s520_s9 = smov [#allocation2]   ;;  %s448_s13 = scalar_lea.hbm %s752_s0, 4096 }
   0x3   :  { %s16_s10 = sshll.u32 %s520_s9, 4  ;;  %p449_p0 = scmp.ne.s32.totalorder %s752_s0, %s448_s13  ;;  %s17_s10 = int_to_ptr.vmem [resolvable:$true] %s16_s10 }
   0x4   :  { %p452_p1 = scmp.lt.u32.totalorder %s448_s13, %s752_s0 }
   0x6   :  { %p454_p2 = pnand %p452_p1, %p449_p0 }
   0x8   :  { %457 = shalt.err (!%p454_p2)
}
   0x9   :  { %s458_s18 = scalar_lea.vmem %s17_s10, 4096  ;;  %p463_p4 = scmp.lt.s32.totalorder %s17_s10, %s17_s10 }
   0xa   :  { %p459_p3 = scmp.ne.s32.totalorder %s17_s10, %s458_s18  ;;  %p464_p5 = scmp.lt.s32.totalorder %s458_s18, %s458_s18 }
   0xc   :  { %p465_p6 = por %p464_p5, %p463_p4 }
   0xe   :  { %p466_p7 = pnand %p465_p6, %p459_p3 }
  0x10   :  { %469 = shalt.err (!%p466_p7)
}
  0x11   :  { %s521_s19 = smov 128   ;;  %s522_s20 = smov 8  }
  0x12   :  { %22 = dma.hbm_to_vmem [thread:$0]  %s752_s0, 4096, %s17_s10, [#allocation3], %s521_s19, %s521_s19, %s522_s20  }
  0x13   :  { %514 = dma.done.wait [#allocation3], 4096  }
  0x14   :  { %515 = vsyncadd [#allocation3], 4294963200  ;;  %v555_v0 = vld [vmem:[#allocation2 + $0x10] sm:$0xff]  ;;  %v557_v1 = vld [vmem:[#allocation2] sm:$0xff]  ;;  %s523_s0 = smov [#allocation5]   ;;  %s524_s24 = smov [#allocation6]  }
  0x15   :  { %v559_v2 = vld [vmem:[#allocation2 + $0x18] sm:$0xff]  ;;  %v60_v3 = vmul.f32 %v555_v0, %v555_v0  ;;  %v58_v4 = vmul.f32 %v557_v1, %v557_v1  ;;  %v565_v5 = vld [vmem:[#allocation2 + $0x8] sm:$0xff]  ;;  %v573_v9 = vld [vmem:[#allocation2 + $0x20] sm:$0xff]  ;;  %s351_s23 = sshll.u32 %s523_s0, 4  ;;  %s363_s25 = sshll.u32 %s524_s24, 4  ;;  %s352_s23 = int_to_ptr.vmem [resolvable:$true] %s351_s23  ;;  %s715_s25 = int_to_ptr.vmem [resolvable:$true] %s363_s25 }
  0x16   :  { %v61_v6 = vmul.f32 %v559_v2, %v559_v2  ;;  %v59_v7 = vmul.f32 %v565_v5, %v565_v5  ;;  %v571_v8 = vld [vmem:[#allocation2 + $0x28] sm:$0xff]  ;;  %v62_v11 = vmul.f32 %v573_v9, %v573_v9  ;;  %v579_v12 = vld [vmem:[#allocation2 + $0x38] sm:$0xff]  ;;  %v581_v13 = vld [vmem:[#allocation2 + $0x30] sm:$0xff]  ;;  %s470_s26 = scalar_lea.vmem %s352_s23, 4096  ;;  %p475_p9 = scmp.lt.s32.totalorder %s352_s23, %s352_s23 }
  0x17   :  { %94 = vadd.xlane.f32.xlu1 %v60_v3  ;;  %90 = vadd.xlane.f32.xlu0 %v58_v4  ;;  %v63_v10 = vmul.f32 %v571_v8, %v571_v8  ;;  %v65_v14 = vmul.f32 %v579_v12, %v579_v12  ;;  %v64_v15 = vmul.f32 %v581_v13, %v581_v13  ;;  %v587_v16 = vld [vmem:[#allocation2 + $0x48] sm:$0xff]  ;;  %v589_v17 = vld [vmem:[#allocation2 + $0x40] sm:$0xff]  ;;  %v595_v20 = vld [vmem:[#allocation2 + $0x58] sm:$0xff]  ;;  %p471_p8 = scmp.ne.s32.totalorder %s352_s23, %s470_s26  ;;  %p476_p10 = scmp.lt.s32.totalorder %s470_s26, %s470_s26 }
  0x18   :  { %v67_v18 = vmul.f32 %v587_v16, %v587_v16  ;;  %v66_v19 = vmul.f32 %v589_v17, %v589_v17  ;;  %v597_v21 = vld [vmem:[#allocation2 + $0x50] sm:$0xff]  ;;  %v69_v22 = vmul.f32 %v595_v20, %v595_v20  ;;  %v603_v24 = vld [vmem:[#allocation2 + $0x68] sm:$0xff]  ;;  %v605_v25 = vld [vmem:[#allocation2 + $0x60] sm:$0xff] }
  0x19   :  { %v68_v23 = vmul.f32 %v597_v21, %v597_v21  ;;  %v71_v26 = vmul.f32 %v603_v24, %v603_v24  ;;  %v70_v27 = vmul.f32 %v605_v25, %v605_v25  ;;  %v611_v28 = vld [vmem:[#allocation2 + $0x78] sm:$0xff]  ;;  %v613_v29 = vld [vmem:[#allocation2 + $0x70] sm:$0xff]  ;;  %v619_v32 = vld [vmem:[#allocation2 + $0x88] sm:$0xff]  ;;  %p477_p11 = por %p476_p10, %p475_p9 }
  0x1a   :  { %v73_v30 = vmul.f32 %v611_v28, %v611_v28  ;;  %v72_v31 = vmul.f32 %v613_v29, %v613_v29  ;;  %v621_v33 = vld [vmem:[#allocation2 + $0x80] sm:$0xff]  ;;  %v75_v34 = vmul.f32 %v619_v32, %v619_v32  ;;  %v627_v36 = vld [vmem:[#allocation2 + $0x98] sm:$0xff]  ;;  %v629_v37 = vld [vmem:[#allocation2 + $0x90] sm:$0xff] }
  0x1b   :  { %96 = vadd.xlane.f32.xlu1 %v61_v6  ;;  %92 = vadd.xlane.f32.xlu0 %v59_v7  ;;  %v74_v35 = vmul.f32 %v621_v33, %v621_v33  ;;  %v77_v38 = vmul.f32 %v627_v36, %v627_v36  ;;  %v76_v39 = vmul.f32 %v629_v37, %v629_v37  ;;  %v635_v40 = vld [vmem:[#allocation2 + $0xa8] sm:$0xff]  ;;  %v637_v41 = vld [vmem:[#allocation2 + $0xa0] sm:$0xff]  ;;  %v643_v44 = vld [vmem:[#allocation2 + $0xb8] sm:$0xff]  ;;  %p478_p12 = pnand %p477_p11, %p471_p8 }
  0x1c   :  { %v79_v42 = vmul.f32 %v635_v40, %v635_v40  ;;  %v78_v43 = vmul.f32 %v637_v41, %v637_v41  ;;  %v645_v45 = vld [vmem:[#allocation2 + $0xb0] sm:$0xff]  ;;  %v81_v46 = vmul.f32 %v643_v44, %v643_v44  ;;  %v651_v48 = vld [vmem:[#allocation2 + $0xc8] sm:$0xff]  ;;  %v653_v49 = vld [vmem:[#allocation2 + $0xc0] sm:$0xff] }
  0x1d   :  { %v80_v47 = vmul.f32 %v645_v45, %v645_v45  ;;  %v83_v50 = vmul.f32 %v651_v48, %v651_v48  ;;  %v82_v51 = vmul.f32 %v653_v49, %v653_v49  ;;  %v659_v52 = vld [vmem:[#allocation2 + $0xd8] sm:$0xff]  ;;  %v661_v53 = vld [vmem:[#allocation2 + $0xd0] sm:$0xff]  ;;  %v667_v56 = vld [vmem:[#allocation2 + $0xe8] sm:$0xff] }
  0x1e   :  { %v85_v54 = vmul.f32 %v659_v52, %v659_v52  ;;  %v84_v55 = vmul.f32 %v661_v53, %v661_v53  ;;  %v669_v57 = vld [vmem:[#allocation2 + $0xe0] sm:$0xff]  ;;  %v87_v58 = vmul.f32 %v667_v56, %v667_v56  ;;  %v675_v60 = vld [vmem:[#allocation2 + $0xf8] sm:$0xff]  ;;  %v677_v61 = vld [vmem:[#allocation2 + $0xf0] sm:$0xff] }
  0x1f   :  { %100 = vadd.xlane.f32.xlu1 %v63_v10  ;;  %98 = vadd.xlane.f32.xlu0 %v62_v11  ;;  %v86_v59 = vmul.f32 %v669_v57, %v669_v57  ;;  %v89_v62 = vmul.f32 %v675_v60, %v675_v60  ;;  %v88_v63 = vmul.f32 %v677_v61, %v677_v61 }
  0x23   :  { %104 = vadd.xlane.f32.xlu1 %v65_v14  ;;  %102 = vadd.xlane.f32.xlu0 %v64_v15 }
  0x27   :  { %108 = vadd.xlane.f32.xlu1 %v67_v18  ;;  %106 = vadd.xlane.f32.xlu0 %v66_v19 }
  0x2b   :  { %112 = vadd.xlane.f32.xlu1 %v69_v22  ;;  %110 = vadd.xlane.f32.xlu0 %v68_v23 }
  0x2f   :  { %116 = vadd.xlane.f32.xlu1 %v71_v26  ;;  %114 = vadd.xlane.f32.xlu0 %v70_v27 }
  0x33   :  { %120 = vadd.xlane.f32.xlu1 %v73_v30  ;;  %118 = vadd.xlane.f32.xlu0 %v72_v31 }
  0x37   :  { %124 = vadd.xlane.f32.xlu1 %v75_v34  ;;  %122 = vadd.xlane.f32.xlu0 %v74_v35 }
  0x3b   :  { %128 = vadd.xlane.f32.xlu1 %v77_v38  ;;  %126 = vadd.xlane.f32.xlu0 %v76_v39 }
  0x3f   :  { %132 = vadd.xlane.f32.xlu1 %v79_v42  ;;  %130 = vadd.xlane.f32.xlu0 %v78_v43 }
  0x43   :  { %136 = vadd.xlane.f32.xlu1 %v81_v46  ;;  %134 = vadd.xlane.f32.xlu0 %v80_v47 }
  0x47   :  { %140 = vadd.xlane.f32.xlu1 %v83_v50  ;;  %138 = vadd.xlane.f32.xlu0 %v82_v51 }
  0x4b   :  { %144 = vadd.xlane.f32.xlu1 %v85_v54  ;;  %142 = vadd.xlane.f32.xlu0 %v84_v55 }
  0x4f   :  { %148 = vadd.xlane.f32.xlu1 %v87_v58  ;;  %146 = vadd.xlane.f32.xlu0 %v86_v59 }
  0x53   :  { %152 = vadd.xlane.f32.xlu1 %v89_v62  ;;  %150 = vadd.xlane.f32.xlu0 %v88_v63 }
  0xa4   :  { %v95_v3 = vpop.xlane.xlu1 %94  ;;  %v91_v4 = vpop.xlane.xlu0 %90 }
  0xa5   :  { %v156_v6 = vmax.f32 %v95_v3, 1e-20  ;;  %v154_v7 = vmax.f32 %v91_v4, 1e-20 }
  0xa7   :  { %384 = vrsqrt.f32 %v156_v6 }
  0xa8   :  { %386 = vrsqrt.f32 %v154_v7  ;;  %v97_v10 = vpop.xlane.xlu1 %96  ;;  %v93_v11 = vpop.xlane.xlu0 %92 }
  0xa9   :  { %v157_v14 = vmax.f32 %v97_v10, 1e-20  ;;  %v155_v15 = vmax.f32 %v93_v11, 1e-20 }
  0xab   :  { %388 = vrsqrt.f32 %v157_v14 }
  0xac   :  { %390 = vrsqrt.f32 %v155_v15  ;;  %v101_v18 = vpop.xlane.xlu1 %100  ;;  %v99_v19 = vpop.xlane.xlu0 %98 }
  0xad   :  { %v159_v22 = vmax.f32 %v101_v18, 1e-20  ;;  %v158_v23 = vmax.f32 %v99_v19, 1e-20 }
  0xaf   :  { %392 = vrsqrt.f32 %v159_v22 }
  0xb0   :  { %394 = vrsqrt.f32 %v158_v23  ;;  %v105_v26 = vpop.xlane.xlu1 %104  ;;  %v103_v27 = vpop.xlane.xlu0 %102 }
  0xb1   :  { %v385_v30 = vpop.eup %384  ;;  %v161_v31 = vmax.f32 %v105_v26, 1e-20  ;;  %v160_v34 = vmax.f32 %v103_v27, 1e-20 }
  0xb2   :  { %v387_v35 = vpop.eup %386  ;;  %v220_v38 = vmul.f32 1.4142135, %v385_v30 }
  0xb3   :  { %v218_v39 = vmul.f32 1.4142135, %v387_v35  ;;  %396 = vrsqrt.f32 %v161_v31 }
  0xb4   :  { %v252_v42 = vmul.f32 %v220_v38, %v555_v0  ;;  %398 = vrsqrt.f32 %v160_v34  ;;  %v109_v43 = vpop.xlane.xlu1 %108  ;;  %v107_v46 = vpop.xlane.xlu0 %106 }
  0xb5   :  { %v389_v47 = vpop.eup %388  ;;  %v250_v50 = vmul.f32 %v218_v39, %v557_v1  ;;  %v163_v51 = vmax.f32 %v109_v43, 1e-20  ;;  %v162_v54 = vmax.f32 %v107_v46, 1e-20 }
  0xb6   :  { %v391_v55 = vpop.eup %390  ;;  %284 = vst [vmem:[#allocation5 + $0x10] sm:$0xff] %v252_v42  ;;  %316 = vst [vmem:[#allocation6 + $0x10] sm:$0xff] %v252_v42  ;;  %v221_v58 = vmul.f32 1.4142135, %v389_v47 }
  0xb7   :  { %282 = vst [vmem:[#allocation5] sm:$0xff] %v250_v50  ;;  %314 = vst [vmem:[#allocation6] sm:$0xff] %v250_v50  ;;  %v219_v59 = vmul.f32 1.4142135, %v391_v55  ;;  %400 = vrsqrt.f32 %v163_v51 }
  0xb8   :  { %v253_v62 = vmul.f32 %v221_v58, %v559_v2  ;;  %402 = vrsqrt.f32 %v162_v54  ;;  %v113_v0 = vpop.xlane.xlu1 %112  ;;  %v111_v63 = vpop.xlane.xlu0 %110 }
  0xb9   :  { %v393_v3 = vpop.eup %392  ;;  %v251_v4 = vmul.f32 %v219_v59, %v565_v5  ;;  %v165_v6 = vmax.f32 %v113_v0, 1e-20  ;;  %v164_v1 = vmax.f32 %v111_v63, 1e-20 }
  0xba   :  { %v395_v7 = vpop.eup %394  ;;  %285 = vst [vmem:[#allocation5 + $0x18] sm:$0xff] %v253_v62  ;;  %317 = vst [vmem:[#allocation6 + $0x18] sm:$0xff] %v253_v62  ;;  %v223_v10 = vmul.f32 1.4142135, %v393_v3 }
  0xbb   :  { %283 = vst [vmem:[#allocation5 + $0x8] sm:$0xff] %v251_v4  ;;  %315 = vst [vmem:[#allocation6 + $0x8] sm:$0xff] %v251_v4  ;;  %v222_v11 = vmul.f32 1.4142135, %v395_v7  ;;  %404 = vrsqrt.f32 %v165_v6 }
  0xbc   :  { %v255_v14 = vmul.f32 %v223_v10, %v571_v8  ;;  %406 = vrsqrt.f32 %v164_v1  ;;  %v117_v2 = vpop.xlane.xlu1 %116  ;;  %v115_v15 = vpop.xlane.xlu0 %114 }
  0xbd   :  { %v397_v18 = vpop.eup %396  ;;  %v254_v19 = vmul.f32 %v222_v11, %v573_v9  ;;  %v167_v22 = vmax.f32 %v117_v2, 1e-20  ;;  %v166_v5 = vmax.f32 %v115_v15, 1e-20 }
  0xbe   :  { %v399_v23 = vpop.eup %398  ;;  %287 = vst [vmem:[#allocation5 + $0x28] sm:$0xff] %v255_v14  ;;  %319 = vst [vmem:[#allocation6 + $0x28] sm:$0xff] %v255_v14  ;;  %v225_v26 = vmul.f32 1.4142135, %v397_v18 }
  0xbf   :  { %286 = vst [vmem:[#allocation5 + $0x20] sm:$0xff] %v254_v19  ;;  %318 = vst [vmem:[#allocation6 + $0x20] sm:$0xff] %v254_v19  ;;  %v224_v27 = vmul.f32 1.4142135, %v399_v23  ;;  %408 = vrsqrt.f32 %v167_v22 }
  0xc0   :  { %v257_v30 = vmul.f32 %v225_v26, %v579_v12  ;;  %410 = vrsqrt.f32 %v166_v5  ;;  %v121_v8 = vpop.xlane.xlu1 %120  ;;  %v119_v31 = vpop.xlane.xlu0 %118 }
  0xc1   :  { %v401_v34 = vpop.eup %400  ;;  %v256_v35 = vmul.f32 %v224_v27, %v581_v13  ;;  %v169_v38 = vmax.f32 %v121_v8, 1e-20  ;;  %v168_v9 = vmax.f32 %v119_v31, 1e-20 }
  0xc2   :  { %v403_v39 = vpop.eup %402  ;;  %289 = vst [vmem:[#allocation5 + $0x38] sm:$0xff] %v257_v30  ;;  %321 = vst [vmem:[#allocation6 + $0x38] sm:$0xff] %v257_v30  ;;  %v227_v42 = vmul.f32 1.4142135, %v401_v34 }
  0xc3   :  { %288 = vst [vmem:[#allocation5 + $0x30] sm:$0xff] %v256_v35  ;;  %320 = vst [vmem:[#allocation6 + $0x30] sm:$0xff] %v256_v35  ;;  %v226_v43 = vmul.f32 1.4142135, %v403_v39  ;;  %412 = vrsqrt.f32 %v169_v38 }
  0xc4   :  { %v259_v46 = vmul.f32 %v227_v42, %v587_v16  ;;  %414 = vrsqrt.f32 %v168_v9  ;;  %v125_v12 = vpop.xlane.xlu1 %124  ;;  %v123_v47 = vpop.xlane.xlu0 %122 }
  0xc5   :  { %v405_v50 = vpop.eup %404  ;;  %v258_v51 = vmul.f32 %v226_v43, %v589_v17  ;;  %v171_v54 = vmax.f32 %v125_v12, 1e-20  ;;  %v170_v13 = vmax.f32 %v123_v47, 1e-20 }
  0xc6   :  { %v407_v55 = vpop.eup %406  ;;  %291 = vst [vmem:[#allocation5 + $0x48] sm:$0xff] %v259_v46  ;;  %323 = vst [vmem:[#allocation6 + $0x48] sm:$0xff] %v259_v46  ;;  %v229_v58 = vmul.f32 1.4142135, %v405_v50 }
  0xc7   :  { %290 = vst [vmem:[#allocation5 + $0x40] sm:$0xff] %v258_v51  ;;  %322 = vst [vmem:[#allocation6 + $0x40] sm:$0xff] %v258_v51  ;;  %v228_v59 = vmul.f32 1.4142135, %v407_v55  ;;  %416 = vrsqrt.f32 %v171_v54 }
  0xc8   :  { %v261_v62 = vmul.f32 %v229_v58, %v595_v20  ;;  %418 = vrsqrt.f32 %v170_v13  ;;  %v129_v16 = vpop.xlane.xlu1 %128  ;;  %v127_v0 = vpop.xlane.xlu0 %126 }
  0xc9   :  { %v409_v63 = vpop.eup %408  ;;  %v260_v3 = vmul.f32 %v228_v59, %v597_v21  ;;  %v173_v4 = vmax.f32 %v129_v16, 1e-20  ;;  %v172_v17 = vmax.f32 %v127_v0, 1e-20 }
  0xca   :  { %v411_v6 = vpop.eup %410  ;;  %293 = vst [vmem:[#allocation5 + $0x58] sm:$0xff] %v261_v62  ;;  %325 = vst [vmem:[#allocation6 + $0x58] sm:$0xff] %v261_v62  ;;  %v231_v1 = vmul.f32 1.4142135, %v409_v63 }
  0xcb   :  { %292 = vst [vmem:[#allocation5 + $0x50] sm:$0xff] %v260_v3  ;;  %324 = vst [vmem:[#allocation6 + $0x50] sm:$0xff] %v260_v3  ;;  %v230_v7 = vmul.f32 1.4142135, %v411_v6  ;;  %420 = vrsqrt.f32 %v173_v4 }
  0xcc   :  { %v263_v10 = vmul.f32 %v231_v1, %v603_v24  ;;  %422 = vrsqrt.f32 %v172_v17  ;;  %v133_v20 = vpop.xlane.xlu1 %132  ;;  %v131_v11 = vpop.xlane.xlu0 %130 }
  0xcd   :  { %v413_v14 = vpop.eup %412  ;;  %v262_v2 = vmul.f32 %v230_v7, %v605_v25  ;;  %v175_v15 = vmax.f32 %v133_v20, 1e-20  ;;  %v174_v21 = vmax.f32 %v131_v11, 1e-20 }
  0xce   :  { %v415_v18 = vpop.eup %414  ;;  %295 = vst [vmem:[#allocation5 + $0x68] sm:$0xff] %v263_v10  ;;  %327 = vst [vmem:[#allocation6 + $0x68] sm:$0xff] %v263_v10  ;;  %v233_v19 = vmul.f32 1.4142135, %v413_v14 }
  0xcf   :  { %294 = vst [vmem:[#allocation5 + $0x60] sm:$0xff] %v262_v2  ;;  %326 = vst [vmem:[#allocation6 + $0x60] sm:$0xff] %v262_v2  ;;  %v232_v22 = vmul.f32 1.4142135, %v415_v18  ;;  %424 = vrsqrt.f32 %v175_v15 }
  0xd0   :  { %v265_v5 = vmul.f32 %v233_v19, %v611_v28  ;;  %426 = vrsqrt.f32 %v174_v21  ;;  %v137_v24 = vpop.xlane.xlu1 %136  ;;  %v135_v23 = vpop.xlane.xlu0 %134 }
  0xd1   :  { %v417_v26 = vpop.eup %416  ;;  %v264_v27 = vmul.f32 %v232_v22, %v613_v29  ;;  %v177_v30 = vmax.f32 %v137_v24, 1e-20  ;;  %v176_v25 = vmax.f32 %v135_v23, 1e-20 }
  0xd2   :  { %v419_v8 = vpop.eup %418  ;;  %297 = vst [vmem:[#allocation5 + $0x78] sm:$0xff] %v265_v5  ;;  %329 = vst [vmem:[#allocation6 + $0x78] sm:$0xff] %v265_v5  ;;  %v235_v31 = vmul.f32 1.4142135, %v417_v26 }
  0xd3   :  { %296 = vst [vmem:[#allocation5 + $0x70] sm:$0xff] %v264_v27  ;;  %328 = vst [vmem:[#allocation6 + $0x70] sm:$0xff] %v264_v27  ;;  %v234_v34 = vmul.f32 1.4142135, %v419_v8  ;;  %428 = vrsqrt.f32 %v177_v30 }
  0xd4   :  { %v267_v35 = vmul.f32 %v235_v31, %v619_v32  ;;  %430 = vrsqrt.f32 %v176_v25  ;;  %v141_v28 = vpop.xlane.xlu1 %140  ;;  %v139_v38 = vpop.xlane.xlu0 %138 }
  0xd5   :  { %v421_v9 = vpop.eup %420  ;;  %v266_v39 = vmul.f32 %v234_v34, %v621_v33  ;;  %v179_v42 = vmax.f32 %v141_v28, 1e-20  ;;  %v178_v29 = vmax.f32 %v139_v38, 1e-20 }
  0xd6   :  { %v423_v43 = vpop.eup %422  ;;  %299 = vst [vmem:[#allocation5 + $0x88] sm:$0xff] %v267_v35  ;;  %331 = vst [vmem:[#allocation6 + $0x88] sm:$0xff] %v267_v35  ;;  %v237_v46 = vmul.f32 1.4142135, %v421_v9 }
  0xd7   :  { %298 = vst [vmem:[#allocation5 + $0x80] sm:$0xff] %v266_v39  ;;  %330 = vst [vmem:[#allocation6 + $0x80] sm:$0xff] %v266_v39  ;;  %v236_v12 = vmul.f32 1.4142135, %v423_v43  ;;  %432 = vrsqrt.f32 %v179_v42 }
  0xd8   :  { %v269_v47 = vmul.f32 %v237_v46, %v627_v36  ;;  %434 = vrsqrt.f32 %v178_v29  ;;  %v145_v32 = vpop.xlane.xlu1 %144  ;;  %v143_v50 = vpop.xlane.xlu0 %142 }
  0xd9   :  { %v425_v51 = vpop.eup %424  ;;  %v268_v54 = vmul.f32 %v236_v12, %v629_v37  ;;  %v181_v13 = vmax.f32 %v145_v32, 1e-20  ;;  %v180_v33 = vmax.f32 %v143_v50, 1e-20 }
  0xda   :  { %v427_v55 = vpop.eup %426  ;;  %301 = vst [vmem:[#allocation5 + $0x98] sm:$0xff] %v269_v47  ;;  %333 = vst [vmem:[#allocation6 + $0x98] sm:$0xff] %v269_v47  ;;  %v239_v58 = vmul.f32 1.4142135, %v425_v51 }
  0xdb   :  { %300 = vst [vmem:[#allocation5 + $0x90] sm:$0xff] %v268_v54  ;;  %332 = vst [vmem:[#allocation6 + $0x90] sm:$0xff] %v268_v54  ;;  %v238_v59 = vmul.f32 1.4142135, %v427_v55  ;;  %436 = vrsqrt.f32 %v181_v13 }
  0xdc   :  { %v271_v62 = vmul.f32 %v239_v58, %v635_v40  ;;  %438 = vrsqrt.f32 %v180_v33  ;;  %v149_v36 = vpop.xlane.xlu1 %148  ;;  %v147_v16 = vpop.xlane.xlu0 %146 }
  0xdd   :  { %v429_v0 = vpop.eup %428  ;;  %v270_v63 = vmul.f32 %v238_v59, %v637_v41  ;;  %v183_v3 = vmax.f32 %v149_v36, 1e-20  ;;  %v182_v37 = vmax.f32 %v147_v16, 1e-20 }
  0xde   :  { %v431_v4 = vpop.eup %430  ;;  %303 = vst [vmem:[#allocation5 + $0xa8] sm:$0xff] %v271_v62  ;;  %335 = vst [vmem:[#allocation6 + $0xa8] sm:$0xff] %v271_v62  ;;  %v241_v17 = vmul.f32 1.4142135, %v429_v0 }
  0xdf   :  { %302 = vst [vmem:[#allocation5 + $0xa0] sm:$0xff] %v270_v63  ;;  %334 = vst [vmem:[#allocation6 + $0xa0] sm:$0xff] %v270_v63  ;;  %v240_v6 = vmul.f32 1.4142135, %v431_v4  ;;  %440 = vrsqrt.f32 %v183_v3 }
  0xe0   :  { %v273_v1 = vmul.f32 %v241_v17, %v643_v44  ;;  %442 = vrsqrt.f32 %v182_v37  ;;  %v153_v40 = vpop.xlane.xlu1 %152  ;;  %v151_v7 = vpop.xlane.xlu0 %150 }
  0xe1   :  { %v433_v10 = vpop.eup %432  ;;  %v272_v20 = vmul.f32 %v240_v6, %v645_v45  ;;  %v185_v11 = vmax.f32 %v153_v40, 1e-20  ;;  %v184_v41 = vmax.f32 %v151_v7, 1e-20 }
  0xe2   :  { %v435_v14 = vpop.eup %434  ;;  %305 = vst [vmem:[#allocation5 + $0xb8] sm:$0xff] %v273_v1  ;;  %337 = vst [vmem:[#allocation6 + $0xb8] sm:$0xff] %v273_v1  ;;  %v243_v2 = vmul.f32 1.4142135, %v433_v10 }
  0xe3   :  { %304 = vst [vmem:[#allocation5 + $0xb0] sm:$0xff] %v272_v20  ;;  %336 = vst [vmem:[#allocation6 + $0xb0] sm:$0xff] %v272_v20  ;;  %v242_v15 = vmul.f32 1.4142135, %v435_v14  ;;  %444 = vrsqrt.f32 %v185_v11 }
  0xe4   :  { %v275_v21 = vmul.f32 %v243_v2, %v651_v48  ;;  %446 = vrsqrt.f32 %v184_v41 }
  0xe5   :  { %v437_v44 = vpop.eup %436  ;;  %v274_v18 = vmul.f32 %v242_v15, %v653_v49 }
  0xe6   :  { %v439_v19 = vpop.eup %438  ;;  %307 = vst [vmem:[#allocation5 + $0xc8] sm:$0xff] %v275_v21  ;;  %339 = vst [vmem:[#allocation6 + $0xc8] sm:$0xff] %v275_v21  ;;  %v245_v45 = vmul.f32 1.4142135, %v437_v44 }
  0xe7   :  { %306 = vst [vmem:[#allocation5 + $0xc0] sm:$0xff] %v274_v18  ;;  %338 = vst [vmem:[#allocation6 + $0xc0] sm:$0xff] %v274_v18  ;;  %v244_v22 = vmul.f32 1.4142135, %v439_v19 }
  0xe8   :  { %v277_v5 = vmul.f32 %v245_v45, %v659_v52 }
  0xe9   :  { %v441_v24 = vpop.eup %440  ;;  %v276_v23 = vmul.f32 %v244_v22, %v661_v53 }
  0xea   :  { %v443_v26 = vpop.eup %442  ;;  %309 = vst [vmem:[#allocation5 + $0xd8] sm:$0xff] %v277_v5  ;;  %341 = vst [vmem:[#allocation6 + $0xd8] sm:$0xff] %v277_v5  ;;  %v247_v48 = vmul.f32 1.4142135, %v441_v24 }
  0xeb   :  { %308 = vst [vmem:[#allocation5 + $0xd0] sm:$0xff] %v276_v23  ;;  %340 = vst [vmem:[#allocation6 + $0xd0] sm:$0xff] %v276_v23  ;;  %v246_v27 = vmul.f32 1.4142135, %v443_v26 }
  0xec   :  { %v279_v49 = vmul.f32 %v247_v48, %v667_v56 }
  0xed   :  { %v445_v30 = vpop.eup %444  ;;  %v278_v25 = vmul.f32 %v246_v27, %v669_v57 }
  0xee   :  { %v447_v8 = vpop.eup %446  ;;  %311 = vst [vmem:[#allocation5 + $0xe8] sm:$0xff] %v279_v49  ;;  %343 = vst [vmem:[#allocation6 + $0xe8] sm:$0xff] %v279_v49  ;;  %v249_v31 = vmul.f32 1.4142135, %v445_v30 }
  0xef   :  { %310 = vst [vmem:[#allocation5 + $0xe0] sm:$0xff] %v278_v25  ;;  %342 = vst [vmem:[#allocation6 + $0xe0] sm:$0xff] %v278_v25  ;;  %v248_v52 = vmul.f32 1.4142135, %v447_v8 }
  0xf0   :  { %v281_v53 = vmul.f32 %v249_v31, %v675_v60 }
  0xf1   :  { %v280_v34 = vmul.f32 %v248_v52, %v677_v61 }
  0xf2   :  { %313 = vst [vmem:[#allocation5 + $0xf8] sm:$0xff] %v281_v53  ;;  %345 = vst [vmem:[#allocation6 + $0xf8] sm:$0xff] %v281_v53 }
  0xf3   :  { %312 = vst [vmem:[#allocation5 + $0xf0] sm:$0xff] %v280_v34  ;;  %344 = vst [vmem:[#allocation6 + $0xf0] sm:$0xff] %v280_v34 }
  0xf4   :  { %481 = shalt.err (!%p478_p12)
}
  0xf5   :  { %s482_s29 = scalar_lea.hbm %s753_s1, 4096 }
  0xf6   :  { %p483_p13 = scmp.ne.s32.totalorder %s753_s1, %s482_s29  ;;  %p486_p0 = scmp.lt.u32.totalorder %s482_s29, %s753_s1 }
  0xf8   :  { %p488_p1 = pnand %p486_p0, %p483_p13 }
  0xfa   :  { %491 = shalt.err (!%p488_p1)
}
  0xfb   :  { %357 = dma.vmem_to_hbm [thread:$0]  %s352_s23, 4096, %s753_s1, [#allocation4], %s521_s19, %s521_s19, %s522_s20  }
  0xfc   :  { %s492_s8 = scalar_lea.vmem %s715_s25, 4096  ;;  %p497_p3 = scmp.lt.s32.totalorder %s715_s25, %s715_s25 }
  0xfd   :  { %p493_p2 = scmp.ne.s32.totalorder %s715_s25, %s492_s8  ;;  %p498_p4 = scmp.lt.s32.totalorder %s492_s8, %s492_s8 }
  0xff   :  { %p499_p5 = por %p498_p4, %p497_p3 }
 0x101   :  { %p500_p6 = pnand %p499_p5, %p493_p2 }
 0x103   :  { %503 = shalt.err (!%p500_p6)
}
 0x104   :  { %s504_s11 = scalar_lea.hbm %s754_s2, 4096 }
 0x105   :  { %p505_p7 = scmp.ne.s32.totalorder %s754_s2, %s504_s11  ;;  %p508_p8 = scmp.lt.u32.totalorder %s504_s11, %s754_s2 }
 0x107   :  { %p510_p9 = pnand %p508_p8, %p505_p7 }
 0x109   :  { %513 = shalt.err (!%p510_p9)
}
 0x10a   :  { %369 = dma.vmem_to_hbm [thread:$0]  %s715_s25, 4096, %s754_s2, [#allocation7], %s521_s19, %s521_s19, %s522_s20  }
 0x10b   :  { %516 = dma.done.wait [#allocation4], 4096  }
 0x10c   :  { %517 = vsyncadd [#allocation4], 4294963200 }
 0x10d   :  { %518 = dma.done.wait [#allocation7], 4096  }
 0x10e   :  { %519 = vsyncadd [#allocation7], 4294963200 }
 0x10f   :  { %376 = vsyncpa [#allocation3], 1 }
 0x110   :  { %377 = vsyncpa [#allocation4], 1 }
 0x111   :  { %378 = vsyncpa [#allocation7], 1 }

</bundles_post_ra>
